<compile_context>
chip_gen: v7x
topology: tpu7x:2x2x1
jax: 0.10.0
libtpu: 0.0.40
codegen_flags: <defaults>
</compile_context>

<pallas_src>
import jax
import jax.numpy as jnp
from jax.experimental import pallas as pl
from jax.experimental.pallas import tpu as pltpu

SEEDS = 8                       # opt.seeds stand-in (synthetic, deterministic)
OUT_FEATURES = 5 * SEEDS        # output_shape of the Linear layer (= 40)


def linear_sigmoid_kernel(x_ref, wt_ref, o_ref):
    # x_ref : (TB, 1)           VMEM — one scalar input feature per instance.
    # wt_ref: (1, OUT_FEATURES) VMEM — shared Linear(1, OUT) weight row.
    # o_ref : (TB, OUT_FEATURES) VMEM.
    z = x_ref[...] * wt_ref[...]          # (TB,1)*(1,OUT) broadcast on the VPU
    o_ref[...] = jax.nn.sigmoid(z)        # logistic on the EUP slot


def agent_forward_batched(xs, weight, *, block_b=512):
    """Fused batch of forward steps.

    xs    : (B, 1) f32 — B independent scalar inputs.
    weight: (OUT_FEATURES, 1) f32 (PyTorch layout).
    Returns (B, SEEDS, 1, 5) f32 — per-instance out.view(seeds, 1, 5).
    """
    B = xs.shape[0]
    # (OUT, 1) -> (1, OUT): pure layout for a column vector (== weight.T).
    wt = weight.reshape(1, OUT_FEATURES)

    block_b = min(block_b, B)
    grid_b = pl.cdiv(B, block_b)

    out = pl.pallas_call(
        linear_sigmoid_kernel,
        out_shape=jax.ShapeDtypeStruct((B, OUT_FEATURES), jnp.float32),
        grid_spec=pl.GridSpec(
            grid=(grid_b,),
            in_specs=[
                pl.BlockSpec((block_b, 1), lambda i: (i, 0)),            # xs
                pl.BlockSpec((1, OUT_FEATURES), lambda i: (0, 0)),       # weight
            ],
            out_specs=pl.BlockSpec((block_b, OUT_FEATURES), lambda i: (i, 0)),
        ),
        compiler_params=pltpu.CompilerParams(
            dimension_semantics=("parallel",)),   # v7x: split grid over 2 TCs
    )(xs, wt)

    return out.reshape(B, SEEDS, 1, 5)


def agent_forward(x, weight):
    """Module-exact forward: x (1, 1) f32 -> (SEEDS, 1, 5) f32."""
    return agent_forward_batched(x, weight)[0]


if __name__ == "__main__":
    key = jax.random.PRNGKey(0)
    k_x, k_w, k_b = jax.random.split(key, 3)

    # Deterministic synthetic parameters for Linear(1, 5*SEEDS, bias=None).
    weight = jax.random.uniform(
        k_w, (OUT_FEATURES, 1), dtype=jnp.float32, minval=-1.0, maxval=1.0)

    # --- module-exact single forward: (1, 1) -> (SEEDS, 1, 5) ---------------
    x = jax.random.normal(k_x, (1, 1), dtype=jnp.float32)
    out = jax.block_until_ready(agent_forward(x, weight))
    ref = jax.nn.sigmoid(x @ weight.T).reshape(SEEDS, 1, 5)
    assert out.shape == (SEEDS, 1, 5)
    assert jnp.allclose(out, ref, atol=1e-5), "single-instance mismatch"

    # --- batched forward: B steps fused into one pallas_call (grid path) ----
    B = 16
    xs = jax.random.normal(k_b, (B, 1), dtype=jnp.float32)
    out_b = jax.block_until_ready(
        agent_forward_batched(xs, weight, block_b=8))   # grid=(2,) exercised
    ref_b = jax.nn.sigmoid(xs @ weight.T).reshape(B, SEEDS, 1, 5)
    assert out_b.shape == (B, SEEDS, 1, 5)
    assert jnp.allclose(out_b, ref_b, atol=1e-5), "batched mismatch"

    print("KERNEL_OK")
</pallas_src>

<mosaic_0001>
module attributes {stable_mosaic.version = 11 : i64} {
  func.func @linear_sigmoid_kernel(%arg0: i32, %arg1: memref<1x1xf32, #tpu.memory_space<vmem>>, %arg2: memref<1x40xf32, #tpu.memory_space<vmem>>, %arg3: memref<1x40xf32, #tpu.memory_space<vmem>>) attributes {dimension_semantics = [#tpu.dimension_semantics<parallel>], iteration_bounds = array<i64: 1>, scalar_prefetch = 0 : i64, scratch_operands = 0 : i64, tpu.core_type = #tpu.core_type<tc>, window_params = [{transform_indices = @transform_0, window_bounds = array<i64: 1, 1>}, {pipeline_mode = #tpu.pipeline_mode<synchronous>, transform_indices = @transform_1, window_bounds = array<i64: 1, 40>}, {transform_indices = @transform_2, window_bounds = array<i64: 1, 40>}]} {
    %c0 = arith.constant 0 : index
    %c0_0 = arith.constant 0 : index
    %0 = vector.load %arg1[%c0, %c0_0] : memref<1x1xf32, #tpu.memory_space<vmem>>, vector<1x1xf32>
    %c0_1 = arith.constant 0 : index
    %c0_2 = arith.constant 0 : index
    %1 = vector.load %arg2[%c0_1, %c0_2] : memref<1x40xf32, #tpu.memory_space<vmem>>, vector<1x40xf32>
    %2 = vector.broadcast %0 : vector<1x1xf32> to vector<1x40xf32>
    %3 = arith.mulf %2, %1 : vector<1x40xf32>
    %4 = arith.negf %3 : vector<1x40xf32>
    %5 = math.exp %4 : vector<1x40xf32>
    %cst = arith.constant 1.000000e+00 : f32
    %6 = vector.broadcast %cst : f32 to vector<1x40xf32>
    %7 = arith.addf %6, %5 : vector<1x40xf32>
    %8 = arith.divf %6, %7 : vector<1x40xf32>
    %c0_3 = arith.constant 0 : index
    %c0_4 = arith.constant 0 : index
    %9 = vector.load %arg3[%c0_3, %c0_4] : memref<1x40xf32, #tpu.memory_space<vmem>>, vector<1x40xf32>
    tpu.vector_store %arg3[%c0_3, %c0_4], %8 {strides = array<i32>} : memref<1x40xf32, #tpu.memory_space<vmem>>, vector<1x40xf32>,
    return
  }
  func.func @transform_0(%arg0: i32) -> (i32, i32) {
    %c0_i32 = arith.constant 0 : i32
    %c0_i32_0 = arith.constant 0 : i32
    return %arg0, %c0_i32 : i32, i32
  }
  func.func @transform_1(%arg0: i32) -> (i32, i32) {
    %c0_i32 = arith.constant 0 : i32
    %c0_i32_0 = arith.constant 0 : i32
    %c0_i32_1 = arith.constant 0 : i32
    return %c0_i32, %c0_i32_0 : i32, i32
  }
  func.func @transform_2(%arg0: i32) -> (i32, i32) {
    %c0_i32 = arith.constant 0 : i32
    %c0_i32_0 = arith.constant 0 : i32
    return %arg0, %c0_i32 : i32, i32
  }
}

</mosaic_0001>

<bundles_post_ra>
// kernel: tpu_custom_call.1
= control target key start
LH: loop header
LB: loop body
LE: loop exit
PB: predicated region body
PF: predicated region fallthrough
CT: control target
= control target key end

     0   :  { %s115_s0 = inlined_call_operand.<no memory space> [shape: f32[1,1], index: 0, kind: input, shape index: {}]   ;;  %s116_s1 = inlined_call_operand.vmem [shape: f32[1,40], index: 1, kind: input, shape index: {}]   ;;  %s117_s2 = inlined_call_operand.hbm [shape: f32[1,40], index: 2, kind: output, shape index: {}]  }
   0x1   :  { %v7_v0 = vstv %s115_s0 }
   0x2   :  { %8 = vst [vmem:[#allocation2] sm:$0x1] %v7_v0 }
   0x3   :  { %v80_v2 = vmov 0  }
   0x4   :  { %51 = vset.pattern.permute.xlu0 %v80_v2 }
   0x9   :  { %v14_v1 = vld [vmem:[#allocation2] sm:$0x1] }
   0xa   :  { %9 = vsyncpa [#allocation4], 0  ;;  %18 = vperm.xlu0 %51, %v14_v1   ;;  %v21_v3 = vlaneseq  ;;  %v15_v6 = vld [vmem:[%s116_s1] sm:$0x1]  ;;  %s81_s0 = smov [#allocation3]   ;;  %vm32_vm0 = vcmask 319488  }
   0xb   :  { %s40_s13 = sshll.u32 %s81_s0, 4  ;;  %s41_s13 = int_to_ptr.vmem [resolvable:$true] %s40_s13 }
   0xc   :  { %v22_v4 = vshrl.u32 %v21_v3, 7  ;;  %s56_s14 = scalar_lea.vmem %s41_s13, 16  ;;  %s60_s15 = scalar_lea.vmem %s41_s13, 32 }
   0xd   :  { %p57_p0 = scmp.ne.s32.totalorder %s41_s13, %s56_s14  ;;  %p61_p1 = scmp.lt.s32.totalorder %s41_s13, %s41_s13 }
   0xe   :  { %v23_v5 = vsub.s32 0, %v22_v4  ;;  %p62_p2 = scmp.lt.s32.totalorder %s60_s15, %s56_s14 }
  0x10   :  { %p63_p3 = por %p62_p2, %p61_p1 }
  0x12   :  { %p64_p4 = pnand %p63_p3, %p57_p0 }
  0x89   :  { %v19_v7 = vpop.permute.xlu0 %18 }
  0x8a   :  { %v24_v8 = vrot.slane %v19_v7, %v23_v5 }
  0x8c   :  { %v25_v9 = vmul.f32 %v24_v8, %v15_v6 }
  0x8e   :  { %v48_v10 = vmul.f32 -1.442695, %v25_v9 }
  0x90   :  { %52 = vpow2.f32 %v48_v10 }
  0x9a   :  { %v53_v11 = vpop.eup %52 }
  0x9b   :  { %v29_v12 = vadd.f32 1.0, %v53_v11 }
  0x9d   :  { %54 = vrcp.f32 %v29_v12 }
  0xa7   :  { %v55_v13 = vpop.eup %54 }
  0xa8   :  { %33 = vst.msk [vmem:[#allocation3] sm:$0x1] %vm32_vm0, %v55_v13 }
  0xa9   :  { %67 = shalt.err (!%p64_p4)
}
  0xaa   :  { %s68_s17 = scalar_lea.hbm %s117_s2, 16 }
  0xab   :  { %p69_p5 = scmp.ne.s32.totalorder %s117_s2, %s68_s17  ;;  %p72_p6 = scmp.lt.u32.totalorder %s68_s17, %s117_s2 }
  0xad   :  { %p74_p7 = pnand %p72_p6, %p69_p5 }
  0xaf   :  { %77 = shalt.err (!%p74_p7)
}
  0xb0   :  { %43 = dma.vmem_to_hbm [thread:$0]  %s41_s13, 16, %s117_s2, [#allocation4]  }
  0xb1   :  { %78 = dma.done.wait [#allocation4], 16  }
  0xb2   :  { %79 = vsyncadd [#allocation4], 4294967280 }
  0xb3   :  { %47 = vsyncpa [#allocation4], 1 }

</bundles_post_ra>
